<compile_context>
chip_gen: v5e
topology: v5e:2x2
jax: 0.10.0
libtpu: 0.0.40
codegen_flags: <defaults>
</compile_context>

<pallas_src>
import numpy as np
import jax
import jax.numpy as jnp
from jax import lax
from jax.experimental import pallas as pl
from jax.experimental.pallas import tpu as pltpu  # noqa: F401  (TPU backend assumed)

# ---- hyperparameters (argparse values hardcoded for this synthetic kernel) ----
EM_DIMS = 32          # em_dims
CONTEXT_LEN = 8       # context_len
N_HEAD = 4            # n_head
HEAD_SIZE = EM_DIMS // N_HEAD
FF_DIM = 4 * EM_DIMS
LN_EPS = 1e-5
BATCH = 2


def _normalize(v):
    """LayerNorm without the affine part (affine is folded into the next matmul)."""
    mu = jnp.mean(v, axis=-1, keepdims=True)
    var = jnp.mean((v - mu) ** 2, axis=-1, keepdims=True)
    return (v - mu) * lax.rsqrt(var + LN_EPS)


def _layernorm(v, g, b):
    return _normalize(v) * g + b


# ----------------------------- Pallas kernel -----------------------------

def block_kernel(x_ref, bias_ref, wqkv_ref, bqkv_ref, wo_ref, bo_ref,
                 w1_ref, b1_ref, w2_ref, b2_ref, out_ref):
    """Fused transformer Block over flattened (N, D) activations, N = B*T."""
    x = x_ref[...]                                       # (N, D)
    D = x.shape[-1]

    # --- x + MultiHeadAttention(LayerNorm1(x)) ---
    h = _normalize(x)                                    # LN1 affine folded into wqkv/bqkv
    qkv = jnp.dot(h, wqkv_ref[...],
                  preferred_element_type=jnp.float32) + bqkv_ref[...]     # (N, 3D)
    bias = bias_ref[...]                                  # (N, N): 0 allowed / -1e30 masked

    head_outs = []
    for hh in range(N_HEAD):                              # static unroll, heads independent
        lo = hh * HEAD_SIZE
        q = qkv[:, lo:lo + HEAD_SIZE]                     # (N, hs), pre-scaled by hs**-0.5
        k = qkv[:, D + lo:D + lo + HEAD_SIZE]             # (N, hs)
        v = qkv[:, 2 * D + lo:2 * D + lo + HEAD_SIZE]     # (N, hs)
        # s = q @ k^T  (contraction on hs, no explicit transpose materialized)
        s = lax.dot_general(q, k, (((1,), (1,)), ((), ())),
                            preferred_element_type=jnp.float32) + bias    # (N, N)
        s = s - jnp.max(s, axis=-1, keepdims=True)
        p = jnp.exp(s)                                    # masked entries underflow to 0
        p = p * pl.reciprocal(jnp.sum(p, axis=-1, keepdims=True), approx=True)
        head_outs.append(jnp.dot(p, v, preferred_element_type=jnp.float32))  # (N, hs)

    o = jnp.concatenate(head_outs, axis=-1)               # (N, D)  == torch.cat over heads
    x = x + jnp.dot(o, wo_ref[...], preferred_element_type=jnp.float32) + bo_ref[...]

    # --- x + FeedForward(LayerNorm2(x)) ---
    h2 = _normalize(x)                                    # LN2 affine folded into w1/b1
    f = jnp.dot(h2, w1_ref[...], preferred_element_type=jnp.float32) + b1_ref[...]
    f = jnp.maximum(f, 0.0)                               # ReLU
    f = jnp.dot(f, w2_ref[...], preferred_element_type=jnp.float32) + b2_ref[...]
    out_ref[...] = (x + f).astype(out_ref.dtype)


# ----------------------------- wrappers -----------------------------

def prepare_block_params(p, batch, seq):
    """Prep-time algebra: fuse QKV, fold scale + LN affines into weights, build mask bias."""
    scale = float(HEAD_SIZE) ** -0.5
    # Fused QKV with the attention scale folded into the q columns.
    wqkv_raw = jnp.concatenate([p['wq'] * scale, p['wk'], p['wv']], axis=1)   # (D, 3D)
    # Fold LN1 affine:  (norm(x)*g1 + b1) @ W  ==  norm(x) @ (g1^T * W) + (b1 @ W)
    wqkv = p['ln1_g'].reshape(-1, 1) * wqkv_raw                                # (D, 3D)
    bqkv = p['ln1_b'] @ wqkv_raw                                               # (1, 3D)
    # Fold LN2 affine into the first FF weight the same way.
    w1 = p['ln2_g'].reshape(-1, 1) * p['w1']                                   # (D, 4D)
    b1 = p['b1'] + p['ln2_b'] @ p['w1']                                        # (1, 4D)

    n = batch * seq
    idx = jnp.arange(n)
    b_id, t_id = idx // seq, idx % seq
    allowed = (b_id[:, None] == b_id[None, :]) & (t_id[:, None] >= t_id[None, :])
    mask_bias = jnp.where(allowed, 0.0, -1e30).astype(jnp.float32)             # (N, N)

    return {'wqkv': wqkv, 'bqkv': bqkv, 'wo': p['wo'], 'bo': p['bo'],
            'w1': w1, 'b1': b1, 'w2': p['w2'], 'b2': p['b2'],
            'mask_bias': mask_bias}


def run_block(x, prep):
    """x: (B, T, D) -> (B, T, D). One pallas_call, no grid; all operands VMEM-resident."""
    B, T, D = x.shape
    N = B * T
    out = pl.pallas_call(
        block_kernel,
        out_shape=jax.ShapeDtypeStruct((N, D), x.dtype),
        # No grid / specs: single invocation, whole arrays resident in VMEM.
    )(x.reshape(N, D), prep['mask_bias'], prep['wqkv'], prep['bqkv'],
      prep['wo'], prep['bo'], prep['w1'], prep['b1'], prep['w2'], prep['b2'])
    return out.reshape(B, T, D)


# ----------------------------- params & reference -----------------------------

def init_params(key):
    def nrm(k, shape, scale=0.1):
        return (scale * jax.random.normal(k, shape)).astype(jnp.float32)

    kk = jax.random.split(key, 13)
    return {
        # Non-trivial LN affines so the prep-time folding is actually exercised.
        'ln1_g': (1.0 + 0.1 * jax.random.normal(kk[9], (1, EM_DIMS))).astype(jnp.float32),
        'ln1_b': nrm(kk[10], (1, EM_DIMS)),
        'wq': nrm(kk[0], (EM_DIMS, EM_DIMS)),      # per-head (D, hs) slices along columns
        'wk': nrm(kk[1], (EM_DIMS, EM_DIMS)),
        'wv': nrm(kk[2], (EM_DIMS, EM_DIMS)),
        'wo': nrm(kk[3], (EM_DIMS, EM_DIMS)),      # concat-proj weight (applied as o @ wo)
        'bo': nrm(kk[6], (1, EM_DIMS)),
        'ln2_g': (1.0 + 0.1 * jax.random.normal(kk[11], (1, EM_DIMS))).astype(jnp.float32),
        'ln2_b': nrm(kk[12], (1, EM_DIMS)),
        'w1': nrm(kk[4], (EM_DIMS, FF_DIM)),
        'b1': nrm(kk[7], (1, FF_DIM)),
        'w2': nrm(kk[5], (FF_DIM, EM_DIMS)),
        'b2': nrm(kk[8], (1, EM_DIMS)),
    }


def ref_block(x, p):
    """Pure-JAX reference mirroring the PyTorch Block semantics (dropout = identity)."""
    T = x.shape[1]
    h = _layernorm(x, p['ln1_g'], p['ln1_b'])
    mask = jnp.tril(jnp.ones((T, T), dtype=bool))
    scale = float(HEAD_SIZE) ** -0.5
    head_outs = []
    for hh in range(N_HEAD):
        sl = slice(hh * HEAD_SIZE, (hh + 1) * HEAD_SIZE)
        q = h @ p['wq'][:, sl]
        k = h @ p['wk'][:, sl]
        v = h @ p['wv'][:, sl]
        s = jnp.einsum('bte,bse->bts', q, k) * scale
        s = jnp.where(mask, s, -jnp.inf)
        pr = jax.nn.softmax(s, axis=-1)
        head_outs.append(jnp.einsum('bts,bse->bte', pr, v))
    o = jnp.concatenate(head_outs, axis=-1)
    x = x + o @ p['wo'] + p['bo']
    h2 = _layernorm(x, p['ln2_g'], p['ln2_b'])
    f = jax.nn.relu(h2 @ p['w1'] + p['b1']) @ p['w2'] + p['b2']
    return x + f


if __name__ == "__main__":
    key = jax.random.PRNGKey(0)
    pkey, xkey = jax.random.split(key)
    params = init_params(pkey)
    x = jax.random.normal(xkey, (BATCH, CONTEXT_LEN, EM_DIMS), dtype=jnp.float32)

    prep = prepare_block_params(params, BATCH, CONTEXT_LEN)
    out = jax.block_until_ready(run_block(x, prep))
    assert out.shape == (BATCH, CONTEXT_LEN, EM_DIMS)

    ref = jax.block_until_ready(ref_block(x, params))
    # tolerance covers pl.reciprocal(approx=True) in softmax + LN-affine weight folding
    np.testing.assert_allclose(np.asarray(out), np.asarray(ref), rtol=5e-3, atol=5e-3)

    print("KERNEL_OK")
</pallas_src>

<mosaic_0001>
module attributes {stable_mosaic.version = 11 : i64} {
  func.func @block_kernel(%arg0: memref<16x32xf32, #tpu.memory_space<vmem>>, %arg1: memref<16x16xf32, #tpu.memory_space<vmem>>, %arg2: memref<32x96xf32, #tpu.memory_space<vmem>>, %arg3: memref<1x96xf32, #tpu.memory_space<vmem>>, %arg4: memref<32x32xf32, #tpu.memory_space<vmem>>, %arg5: memref<1x32xf32, #tpu.memory_space<vmem>>, %arg6: memref<32x128xf32, #tpu.memory_space<vmem>>, %arg7: memref<1x128xf32, #tpu.memory_space<vmem>>, %arg8: memref<128x32xf32, #tpu.memory_space<vmem>>, %arg9: memref<1x32xf32, #tpu.memory_space<vmem>>, %arg10: memref<16x32xf32, #tpu.memory_space<vmem>>) attributes {dimension_semantics = [], scalar_prefetch = 0 : i64, scratch_operands = 0 : i64, tpu.core_type = #tpu.core_type<tc>} {
    %c0 = arith.constant 0 : index
    %c0_0 = arith.constant 0 : index
    %0 = vector.load %arg0[%c0, %c0_0] : memref<16x32xf32, #tpu.memory_space<vmem>>, vector<16x32xf32>
    %cst = arith.constant dense<0.000000e+00> : vector<16xf32>
    %1 = vector.multi_reduction <add>, %0, %cst [1] : vector<16x32xf32> to vector<16xf32>
    %2 = vector.shape_cast %1 : vector<16xf32> to vector<16x1xf32>
    %cst_1 = arith.constant 3.200000e+01 : f32
    %3 = vector.broadcast %cst_1 : f32 to vector<16x1xf32>
    %4 = arith.divf %2, %3 : vector<16x1xf32>
    %5 = vector.broadcast %4 : vector<16x1xf32> to vector<16x32xf32>
    %6 = arith.subf %0, %5 : vector<16x32xf32>
    %7 = arith.mulf %6, %6 : vector<16x32xf32>
    %cst_2 = arith.constant dense<0.000000e+00> : vector<16xf32>
    %8 = vector.multi_reduction <add>, %7, %cst_2 [1] : vector<16x32xf32> to vector<16xf32>
    %9 = vector.shape_cast %8 : vector<16xf32> to vector<16x1xf32>
    %cst_3 = arith.constant 3.200000e+01 : f32
    %10 = vector.broadcast %cst_3 : f32 to vector<16x1xf32>
    %11 = arith.divf %9, %10 : vector<16x1xf32>
    %12 = vector.broadcast %4 : vector<16x1xf32> to vector<16x32xf32>
    %13 = arith.subf %0, %12 : vector<16x32xf32>
    %cst_4 = arith.constant 9.99999974E-6 : f32
    %14 = vector.broadcast %cst_4 : f32 to vector<16x1xf32>
    %15 = arith.addf %11, %14 : vector<16x1xf32>
    %16 = math.rsqrt %15 : vector<16x1xf32>
    %17 = vector.broadcast %16 : vector<16x1xf32> to vector<16x32xf32>
    %18 = arith.mulf %13, %17 : vector<16x32xf32>
    %c0_5 = arith.constant 0 : index
    %c0_6 = arith.constant 0 : index
    %19 = vector.load %arg2[%c0_5, %c0_6] : memref<32x96xf32, #tpu.memory_space<vmem>>, vector<32x96xf32>
    %cst_7 = arith.constant dense<0.000000e+00> : vector<16x96xf32>
    %20 = tpu.matmul %18, %19, %cst_7 {dimension_numbers = #tpu.dot_dimension_numbers<[1], [0], [0], [1], [0, 0, 1, 1], [], []>} : vector<16x32xf32>, vector<32x96xf32>, vector<16x96xf32> -> vector<16x96xf32>
    %c0_8 = arith.constant 0 : index
    %c0_9 = arith.constant 0 : index
    %21 = vector.load %arg3[%c0_8, %c0_9] : memref<1x96xf32, #tpu.memory_space<vmem>>, vector<1x96xf32>
    %22 = vector.broadcast %21 : vector<1x96xf32> to vector<16x96xf32>
    %23 = arith.addf %20, %22 : vector<16x96xf32>
    %c0_10 = arith.constant 0 : index
    %c0_11 = arith.constant 0 : index
    %24 = vector.load %arg1[%c0_10, %c0_11] : memref<16x16xf32, #tpu.memory_space<vmem>>, vector<16x16xf32>
    %25 = vector.extract_strided_slice %23 {offsets = [0, 0], sizes = [16, 8], strides = [1, 1]} : vector<16x96xf32> to vector<16x8xf32>
    %26 = vector.extract_strided_slice %23 {offsets = [0, 32], sizes = [16, 8], strides = [1, 1]} : vector<16x96xf32> to vector<16x8xf32>
    %27 = vector.extract_strided_slice %23 {offsets = [0, 64], sizes = [16, 8], strides = [1, 1]} : vector<16x96xf32> to vector<16x8xf32>
    %cst_12 = arith.constant dense<0.000000e+00> : vector<16x16xf32>
    %28 = tpu.matmul %25, %26, %cst_12 {dimension_numbers = #tpu.dot_dimension_numbers<[1], [1], [0], [0], [0, 0, 1, 0], [], []>} : vector<16x8xf32>, vector<16x8xf32>, vector<16x16xf32> -> vector<16x16xf32>
    %29 = arith.addf %28, %24 : vector<16x16xf32>
    %cst_13 = arith.constant dense<0xFF800000> : vector<16xf32>
    %30 = vector.multi_reduction <maximumf>, %29, %cst_13 [1] : vector<16x16xf32> to vector<16xf32>
    %31 = vector.shape_cast %30 : vector<16xf32> to vector<16x1xf32>
    %32 = vector.broadcast %31 : vector<16x1xf32> to vector<16x16xf32>
    %33 = arith.subf %29, %32 : vector<16x16xf32>
    %34 = math.exp %33 : vector<16x16xf32>
    %cst_14 = arith.constant dense<0.000000e+00> : vector<16xf32>
    %35 = vector.multi_reduction <add>, %34, %cst_14 [1] : vector<16x16xf32> to vector<16xf32>
    %36 = vector.shape_cast %35 : vector<16xf32> to vector<16x1xf32>
    %37 = tpu.reciprocal %36 {approx = true} : vector<16x1xf32> -> vector<16x1xf32>
    %38 = vector.broadcast %37 : vector<16x1xf32> to vector<16x16xf32>
    %39 = arith.mulf %34, %38 : vector<16x16xf32>
    %cst_15 = arith.constant dense<0.000000e+00> : vector<16x8xf32>
    %40 = tpu.matmul %39, %27, %cst_15 {dimension_numbers = #tpu.dot_dimension_numbers<[1], [0], [0], [1], [0, 0, 1, 1], [], []>} : vector<16x16xf32>, vector<16x8xf32>, vector<16x8xf32> -> vector<16x8xf32>
    %41 = vector.extract_strided_slice %23 {offsets = [0, 8], sizes = [16, 8], strides = [1, 1]} : vector<16x96xf32> to vector<16x8xf32>
    %42 = vector.extract_strided_slice %23 {offsets = [0, 40], sizes = [16, 8], strides = [1, 1]} : vector<16x96xf32> to vector<16x8xf32>
    %43 = vector.extract_strided_slice %23 {offsets = [0, 72], sizes = [16, 8], strides = [1, 1]} : vector<16x96xf32> to vector<16x8xf32>
    %cst_16 = arith.constant dense<0.000000e+00> : vector<16x16xf32>
    %44 = tpu.matmul %41, %42, %cst_16 {dimension_numbers = #tpu.dot_dimension_numbers<[1], [1], [0], [0], [0, 0, 1, 0], [], []>} : vector<16x8xf32>, vector<16x8xf32>, vector<16x16xf32> -> vector<16x16xf32>
    %45 = arith.addf %44, %24 : vector<16x16xf32>
    %cst_17 = arith.constant dense<0xFF800000> : vector<16xf32>
    %46 = vector.multi_reduction <maximumf>, %45, %cst_17 [1] : vector<16x16xf32> to vector<16xf32>
    %47 = vector.shape_cast %46 : vector<16xf32> to vector<16x1xf32>
    %48 = vector.broadcast %47 : vector<16x1xf32> to vector<16x16xf32>
    %49 = arith.subf %45, %48 : vector<16x16xf32>
    %50 = math.exp %49 : vector<16x16xf32>
    %cst_18 = arith.constant dense<0.000000e+00> : vector<16xf32>
    %51 = vector.multi_reduction <add>, %50, %cst_18 [1] : vector<16x16xf32> to vector<16xf32>
    %52 = vector.shape_cast %51 : vector<16xf32> to vector<16x1xf32>
    %53 = tpu.reciprocal %52 {approx = true} : vector<16x1xf32> -> vector<16x1xf32>
    %54 = vector.broadcast %53 : vector<16x1xf32> to vector<16x16xf32>
    %55 = arith.mulf %50, %54 : vector<16x16xf32>
    %cst_19 = arith.constant dense<0.000000e+00> : vector<16x8xf32>
    %56 = tpu.matmul %55, %43, %cst_19 {dimension_numbers = #tpu.dot_dimension_numbers<[1], [0], [0], [1], [0, 0, 1, 1], [], []>} : vector<16x16xf32>, vector<16x8xf32>, vector<16x8xf32> -> vector<16x8xf32>
    %57 = vector.extract_strided_slice %23 {offsets = [0, 16], sizes = [16, 8], strides = [1, 1]} : vector<16x96xf32> to vector<16x8xf32>
    %58 = vector.extract_strided_slice %23 {offsets = [0, 48], sizes = [16, 8], strides = [1, 1]} : vector<16x96xf32> to vector<16x8xf32>
    %59 = vector.extract_strided_slice %23 {offsets = [0, 80], sizes = [16, 8], strides = [1, 1]} : vector<16x96xf32> to vector<16x8xf32>
    %cst_20 = arith.constant dense<0.000000e+00> : vector<16x16xf32>
    %60 = tpu.matmul %57, %58, %cst_20 {dimension_numbers = #tpu.dot_dimension_numbers<[1], [1], [0], [0], [0, 0, 1, 0], [], []>} : vector<16x8xf32>, vector<16x8xf32>, vector<16x16xf32> -> vector<16x16xf32>
    %61 = arith.addf %60, %24 : vector<16x16xf32>
    %cst_21 = arith.constant dense<0xFF800000> : vector<16xf32>
    %62 = vector.multi_reduction <maximumf>, %61, %cst_21 [1] : vector<16x16xf32> to vector<16xf32>
    %63 = vector.shape_cast %62 : vector<16xf32> to vector<16x1xf32>
    %64 = vector.broadcast %63 : vector<16x1xf32> to vector<16x16xf32>
    %65 = arith.subf %61, %64 : vector<16x16xf32>
    %66 = math.exp %65 : vector<16x16xf32>
    %cst_22 = arith.constant dense<0.000000e+00> : vector<16xf32>
    %67 = vector.multi_reduction <add>, %66, %cst_22 [1] : vector<16x16xf32> to vector<16xf32>
    %68 = vector.shape_cast %67 : vector<16xf32> to vector<16x1xf32>
    %69 = tpu.reciprocal %68 {approx = true} : vector<16x1xf32> -> vector<16x1xf32>
    %70 = vector.broadcast %69 : vector<16x1xf32> to vector<16x16xf32>
    %71 = arith.mulf %66, %70 : vector<16x16xf32>
    %cst_23 = arith.constant dense<0.000000e+00> : vector<16x8xf32>
    %72 = tpu.matmul %71, %59, %cst_23 {dimension_numbers = #tpu.dot_dimension_numbers<[1], [0], [0], [1], [0, 0, 1, 1], [], []>} : vector<16x16xf32>, vector<16x8xf32>, vector<16x8xf32> -> vector<16x8xf32>
    %73 = vector.extract_strided_slice %23 {offsets = [0, 24], sizes = [16, 8], strides = [1, 1]} : vector<16x96xf32> to vector<16x8xf32>
    %74 = vector.extract_strided_slice %23 {offsets = [0, 56], sizes = [16, 8], strides = [1, 1]} : vector<16x96xf32> to vector<16x8xf32>
    %75 = vector.extract_strided_slice %23 {offsets = [0, 88], sizes = [16, 8], strides = [1, 1]} : vector<16x96xf32> to vector<16x8xf32>
    %cst_24 = arith.constant dense<0.000000e+00> : vector<16x16xf32>
    %76 = tpu.matmul %73, %74, %cst_24 {dimension_numbers = #tpu.dot_dimension_numbers<[1], [1], [0], [0], [0, 0, 1, 0], [], []>} : vector<16x8xf32>, vector<16x8xf32>, vector<16x16xf32> -> vector<16x16xf32>
    %77 = arith.addf %76, %24 : vector<16x16xf32>
    %cst_25 = arith.constant dense<0xFF800000> : vector<16xf32>
    %78 = vector.multi_reduction <maximumf>, %77, %cst_25 [1] : vector<16x16xf32> to vector<16xf32>
    %79 = vector.shape_cast %78 : vector<16xf32> to vector<16x1xf32>
    %80 = vector.broadcast %79 : vector<16x1xf32> to vector<16x16xf32>
    %81 = arith.subf %77, %80 : vector<16x16xf32>
    %82 = math.exp %81 : vector<16x16xf32>
    %cst_26 = arith.constant dense<0.000000e+00> : vector<16xf32>
    %83 = vector.multi_reduction <add>, %82, %cst_26 [1] : vector<16x16xf32> to vector<16xf32>
    %84 = vector.shape_cast %83 : vector<16xf32> to vector<16x1xf32>
    %85 = tpu.reciprocal %84 {approx = true} : vector<16x1xf32> -> vector<16x1xf32>
    %86 = vector.broadcast %85 : vector<16x1xf32> to vector<16x16xf32>
    %87 = arith.mulf %82, %86 : vector<16x16xf32>
    %cst_27 = arith.constant dense<0.000000e+00> : vector<16x8xf32>
    %88 = tpu.matmul %87, %75, %cst_27 {dimension_numbers = #tpu.dot_dimension_numbers<[1], [0], [0], [1], [0, 0, 1, 1], [], []>} : vector<16x16xf32>, vector<16x8xf32>, vector<16x8xf32> -> vector<16x8xf32>
    %89 = tpu.concatenate %40, %56, %72, %88 in 1 : vector<16x8xf32>, vector<16x8xf32>, vector<16x8xf32>, vector<16x8xf32> -> vector<16x32xf32>
    %c0_28 = arith.constant 0 : index
    %c0_29 = arith.constant 0 : index
    %90 = vector.load %arg4[%c0_28, %c0_29] : memref<32x32xf32, #tpu.memory_space<vmem>>, vector<32x32xf32>
    %cst_30 = arith.constant dense<0.000000e+00> : vector<16x32xf32>
    %91 = tpu.matmul %89, %90, %cst_30 {dimension_numbers = #tpu.dot_dimension_numbers<[1], [0], [0], [1], [0, 0, 1, 1], [], []>} : vector<16x32xf32>, vector<32x32xf32>, vector<16x32xf32> -> vector<16x32xf32>
    %92 = arith.addf %0, %91 : vector<16x32xf32>
    %c0_31 = arith.constant 0 : index
    %c0_32 = arith.constant 0 : index
    %93 = vector.load %arg5[%c0_31, %c0_32] : memref<1x32xf32, #tpu.memory_space<vmem>>, vector<1x32xf32>
    %94 = vector.broadcast %93 : vector<1x32xf32> to vector<16x32xf32>
    %95 = arith.addf %92, %94 : vector<16x32xf32>
    %cst_33 = arith.constant dense<0.000000e+00> : vector<16xf32>
    %96 = vector.multi_reduction <add>, %95, %cst_33 [1] : vector<16x32xf32> to vector<16xf32>
    %97 = vector.shape_cast %96 : vector<16xf32> to vector<16x1xf32>
    %cst_34 = arith.constant 3.200000e+01 : f32
    %98 = vector.broadcast %cst_34 : f32 to vector<16x1xf32>
    %99 = arith.divf %97, %98 : vector<16x1xf32>
    %100 = vector.broadcast %99 : vector<16x1xf32> to vector<16x32xf32>
    %101 = arith.subf %95, %100 : vector<16x32xf32>
    %102 = arith.mulf %101, %101 : vector<16x32xf32>
    %cst_35 = arith.constant dense<0.000000e+00> : vector<16xf32>
    %103 = vector.multi_reduction <add>, %102, %cst_35 [1] : vector<16x32xf32> to vector<16xf32>
    %104 = vector.shape_cast %103 : vector<16xf32> to vector<16x1xf32>
    %cst_36 = arith.constant 3.200000e+01 : f32
    %105 = vector.broadcast %cst_36 : f32 to vector<16x1xf32>
    %106 = arith.divf %104, %105 : vector<16x1xf32>
    %107 = vector.broadcast %99 : vector<16x1xf32> to vector<16x32xf32>
    %108 = arith.subf %95, %107 : vector<16x32xf32>
    %cst_37 = arith.constant 9.99999974E-6 : f32
    %109 = vector.broadcast %cst_37 : f32 to vector<16x1xf32>
    %110 = arith.addf %106, %109 : vector<16x1xf32>
    %111 = math.rsqrt %110 : vector<16x1xf32>
    %112 = vector.broadcast %111 : vector<16x1xf32> to vector<16x32xf32>
    %113 = arith.mulf %108, %112 : vector<16x32xf32>
    %c0_38 = arith.constant 0 : index
    %c0_39 = arith.constant 0 : index
    %114 = vector.load %arg6[%c0_38, %c0_39] : memref<32x128xf32, #tpu.memory_space<vmem>>, vector<32x128xf32>
    %cst_40 = arith.constant dense<0.000000e+00> : vector<16x128xf32>
    %115 = tpu.matmul %113, %114, %cst_40 {dimension_numbers = #tpu.dot_dimension_numbers<[1], [0], [0], [1], [0, 0, 1, 1], [], []>} : vector<16x32xf32>, vector<32x128xf32>, vector<16x128xf32> -> vector<16x128xf32>
    %c0_41 = arith.constant 0 : index
    %c0_42 = arith.constant 0 : index
    %116 = vector.load %arg7[%c0_41, %c0_42] : memref<1x128xf32, #tpu.memory_space<vmem>>, vector<1x128xf32>
    %117 = vector.broadcast %116 : vector<1x128xf32> to vector<16x128xf32>
    %118 = arith.addf %115, %117 : vector<16x128xf32>
    %cst_43 = arith.constant 0.000000e+00 : f32
    %119 = vector.broadcast %cst_43 : f32 to vector<16x128xf32>
    %120 = arith.maximumf %118, %119 : vector<16x128xf32>
    %c0_44 = arith.constant 0 : index
    %c0_45 = arith.constant 0 : index
    %121 = vector.load %arg8[%c0_44, %c0_45] : memref<128x32xf32, #tpu.memory_space<vmem>>, vector<128x32xf32>
    %cst_46 = arith.constant dense<0.000000e+00> : vector<16x32xf32>
    %122 = tpu.matmul %120, %121, %cst_46 {dimension_numbers = #tpu.dot_dimension_numbers<[1], [0], [0], [1], [0, 0, 1, 1], [], []>} : vector<16x128xf32>, vector<128x32xf32>, vector<16x32xf32> -> vector<16x32xf32>
    %c0_47 = arith.constant 0 : index
    %c0_48 = arith.constant 0 : index
    %123 = vector.load %arg9[%c0_47, %c0_48] : memref<1x32xf32, #tpu.memory_space<vmem>>, vector<1x32xf32>
    %124 = vector.broadcast %123 : vector<1x32xf32> to vector<16x32xf32>
    %125 = arith.addf %122, %124 : vector<16x32xf32>
    %126 = arith.addf %95, %125 : vector<16x32xf32>
    %c0_49 = arith.constant 0 : index
    %c0_50 = arith.constant 0 : index
    %127 = vector.load %arg10[%c0_49, %c0_50] : memref<16x32xf32, #tpu.memory_space<vmem>>, vector<16x32xf32>
    tpu.vector_store %arg10[%c0_49, %c0_50], %126 {strides = array<i32>} : memref<16x32xf32, #tpu.memory_space<vmem>>, vector<16x32xf32>,
    return
  }
}

</mosaic_0001>

<bundles_post_ra>
// kernel: tpu_custom_call.1
= control target key start
LH: loop header
LB: loop body
LE: loop exit
PB: predicated region body
PF: predicated region fallthrough
CT: control target
= control target key end

     0   :  { %vm38_vm0 = vcmask 261120   ;;  %s1217_s0 = inlined_call_operand.vmem [shape: f32[16,32], index: 0, kind: input, shape index: {}]   ;;  %s1218_s1 = inlined_call_operand.vmem [shape: f32[16,16], index: 1, kind: input, shape index: {}]   ;;  %s1219_s2 = inlined_call_operand.vmem [shape: f32[32,96], index: 2, kind: input, shape index: {}]   ;;  %s1220_s3 = inlined_call_operand.vmem [shape: f32[1,96], index: 3, kind: input, shape index: {}]   ;;  %s1221_s4 = inlined_call_operand.vmem [shape: f32[32,32], index: 4, kind: input, shape index: {}]   ;;  %s1222_s5 = inlined_call_operand.vmem [shape: f32[1,32], index: 5, kind: input, shape index: {}]   ;;  %s1223_s6 = inlined_call_operand.vmem [shape: f32[32,128], index: 6, kind: input, shape index: {}]   ;;  %s1224_s7 = inlined_call_operand.vmem [shape: f32[1,128], index: 7, kind: input, shape index: {}]   ;;  %s1225_s8 = inlined_call_operand.vmem [shape: f32[128,32], index: 8, kind: input, shape index: {}]   ;;  %s1226_s9 = inlined_call_operand.vmem [shape: f32[1,32], index: 9, kind: input, shape index: {}]   ;;  %s1227_s10 = inlined_call_operand.hbm [shape: f32[16,32], index: 10, kind: output, shape index: {}]  }
   0x1   :  { %v949_v0 = vld [vmem:[%s1217_s0] sm:$0xff] }
   0x2   :  { %v39_v1 = vsel %vm38_vm0, %v949_v0, 0.0 }
   0x3   :  { %40 = vadd.xlane.f32.xlu0 %v39_v1 }
   0x4   :  { %15 = vsyncpa [#allocation3], 0  ;;  %v956_v2 = vld [vmem:[%s1217_s0 + $0x8] sm:$0xff]  ;;  %v874_v4 = vmov 32.0   ;;  %v93_v21 = vld [vmem:[%s1219_s2 + $0x18] sm:$0xff]  ;;  %s875_s25 = smov 88  }
   0x5   :  { %v42_v3 = vsel %vm38_vm0, %v956_v2, 0.0  ;;  %806 = vrcp.f32 %v874_v4  ;;  %116 = vmatpush.msra.mxu0 %v93_v21  ;;  %v92_v22 = vld [vmem:[%s1219_s2 + $0x10] sm:$0xff]  ;;  %v91_v23 = vld [vmem:[%s1219_s2 + $0x8] sm:$0xff]  ;;  %v90_v24 = vld [vmem:[%s1219_s2] sm:$0xff]  ;;  %s876_s26 = smov 96   ;;  %s877_s27 = smov 120  }
   0x6   :  { %v802_v48 = vld [vmem:[%s1220_s3] ss:$0 sm:$0xff]  ;;  %vm135_vm8 = vcmask 64512   ;;  %vm167_vm9 = vcmask 130048   ;;  %v1013_v59 = vld [vmem:[%s1218_s1 + $0x8] sm:$0xff]  ;;  %s878_s11 = smov 64  }
   0x7   :  { %117 = vmatpush.msra.mxu0 %v92_v22  ;;  %v1006_v55 = vld [vmem:[%s1218_s1] sm:$0xff]  ;;  %s879_s12 = smov 104   ;;  %s880_s1 = smov 72   ;;  %vm541_vm10 = vcmask 195584  }
   0x8   :  { %s881_s13 = smov 80   ;;  %s882_s14 = smov 112  }
   0x9   :  { %118 = vmatpush.msra.mxu0 %v91_v23  ;;  %s883_s15 = smov 56   ;;  %s884_s16 = smov 48  }
   0xa   :  { %s885_s0 = smov 40   ;;  %s886_s17 = smov 8  }
   0xb   :  { %43 = vadd.xlane.f32.xlu0 %v42_v3  ;;  %v807_v5 = vpop.eup %806  ;;  %119 = vmatpush.msra.mxu0 %v90_v24  ;;  %s887_s18 = smov 16   ;;  %s888_s19 = smov 24  }
   0xc   :  { %v46_v6 = vmul.f32 32.0, %v807_v5  ;;  %vm50_vm1 = vweird.f32 %v807_v5  ;;  %s721_s2 = sshll.u32 %s1227_s10, 4  ;;  %s722_s2 = int_to_ptr.hbm [resolvable:$true] %s721_s2 }
   0xe   :  { %v47_v7 = vsub.f32 1.0, %v46_v6 }
  0x10   :  { %v48_v8 = vmul.f32 %v807_v5, %v47_v7 }
  0x12   :  { %v49_v9 = vadd.f32 %v807_v5, %v48_v8 }
  0x14   :  { %v960_v10 = vsel %vm50_vm1, %v807_v5, %v49_v9 }
  0x76   :  { %v41_v11 = vpop.xlane.xlu0 %40 }
  0x77   :  { %v52_v12 = vmul.f32 %v960_v10, %v41_v11 }
  0x79   :  { %v54_v13 = vsub.f32 %v949_v0, %v52_v12 }
  0x7b   :  { %v56_v14 = vmul.f32 %v54_v13, %v54_v13 }
  0x7d   :  { %v58_v15 = vsel %vm38_vm0, %v56_v14, 0.0 }
  0x7e   :  { %59 = vadd.xlane.f32.xlu1 %v58_v15  ;;  %v44_v16 = vpop.xlane.xlu0 %43 }
  0x7f   :  { %v53_v17 = vmul.f32 %v960_v10, %v44_v16 }
  0x81   :  { %v55_v18 = vsub.f32 %v956_v2, %v53_v17 }
  0x83   :  { %v57_v19 = vmul.f32 %v55_v18, %v55_v18 }
  0x85   :  { %v61_v20 = vsel %vm38_vm0, %v57_v19, 0.0 }
  0x86   :  { %62 = vadd.xlane.f32.xlu1 %v61_v20 }
  0xf1   :  { %v60_v25 = vpop.xlane.xlu1 %59 }
  0xf2   :  { %v64_v26 = vmul.f32 %v60_v25, %v960_v10 }
  0xf4   :  { %v66_v27 = vadd.f32 1e-05, %v64_v26 }
  0xf6   :  { %808 = vrsqrt.f32 %v66_v27  ;;  %vm74_vm3 = vweird.f32 %v66_v27 }
  0xf9   :  { %v63_v28 = vpop.xlane.xlu1 %62 }
  0xfa   :  { %v65_v29 = vmul.f32 %v63_v28, %v960_v10 }
  0xfc   :  { %v809_v30 = vpop.eup %808  ;;  %v67_v31 = vadd.f32 1e-05, %v65_v29 }
  0xfd   :  { %v69_v32 = vmul.f32 %v809_v30, %v66_v27  ;;  %vm75_vm2 = vweird.f32 %v809_v30 }
  0xfe   :  { %810 = vrsqrt.f32 %v67_v31  ;;  %vm76_vm4 = vmor %vm74_vm3, %vm75_vm2  ;;  %vm84_vm6 = vweird.f32 %v67_v31 }
  0xff   :  { %v70_v33 = vmul.f32 %v809_v30, %v69_v32 }
 0x101   :  { %v71_v34 = vmul.f32 0.5, %v70_v33 }
 0x103   :  { %v72_v35 = vsub.f32 1.5, %v71_v34 }
 0x104   :  { %v811_v36 = vpop.eup %810 }
 0x105   :  { %v79_v37 = vmul.f32 %v811_v36, %v67_v31  ;;  %v73_v38 = vmul.f32 %v809_v30, %v72_v35  ;;  %vm85_vm5 = vweird.f32 %v811_v36 }
 0x106   :  { %vm86_vm7 = vmor %vm84_vm6, %vm85_vm5 }
 0x107   :  { %v80_v39 = vmul.f32 %v811_v36, %v79_v37  ;;  %v77_v40 = vsel %vm76_vm4, %v809_v30, %v73_v38 }
 0x108   :  { %v88_v41 = vmul.f32 %v77_v40, %v54_v13 }
 0x109   :  { %v81_v42 = vmul.f32 0.5, %v80_v39 }
 0x10a   :  { %733 = vmatmul.msk.f32.vlgmr.msra.gmra.mxu0 %vm38_vm0, %v88_v41 }
 0x10b   :  { %v82_v43 = vsub.f32 1.5, %v81_v42 }
 0x10d   :  { %v83_v44 = vmul.f32 %v811_v36, %v82_v43 }
 0x10f   :  { %v87_v45 = vsel %vm86_vm7, %v811_v36, %v83_v44 }
 0x110   :  { %v89_v46 = vmul.f32 %v87_v45, %v55_v18 }
 0x112   :  { %734 = vmatmul.msk.f32.gmra.mxu0 %vm38_vm0, %v89_v46 }
 0x187   :  { %v121_v47 = vpop.f32.mrf.mxu0 }
 0x188   :  { %v992_v51 = vadd.f32 %v802_v48, %v121_v47 }
 0x18f   :  { %v124_v49 = vpop.f32.mrf.mxu0 }
 0x190   :  { %v987_v50 = vadd.f32 %v802_v48, %v124_v49 }
 0x192   :  { %231 = vrot.lane.b32.xlu1 %v987_v50, %s875_s25  ;;  %133 = vrot.lane.b32.xlu2 %v987_v50, %s876_s26  ;;  %v1019_v63 = vpack.i.bf16 %v992_v51, %v987_v50 }
 0x19a   :  { %227 = vrot.lane.b32.xlu1 %v987_v50, %s877_s27  ;;  %131 = vrot.lane.b32.xlu2 %v992_v51, %s876_s26 }
 0x1ec   :  { %v134_v52 = vpop.permute.xlu2 %133 }
 0x1ed   :  { %735 = vmatpush.xpose.msk.msra.mxu1 %vm135_vm8, %v134_v52 }
 0x1f4   :  { %v132_v53 = vpop.permute.xlu2 %131 }
 0x1f5   :  { %736 = vmatpush.xpose.msk.msra.mxu1 %vm135_vm8, %v132_v53 }
 0x1f8   :  { %737 = vmatmul.msk.f32.vlgmr.msra.gmra.mxu1 %vm135_vm8, %v992_v51 }
 0x200   :  { %738 = vmatmul.msk.f32.gmra.mxu1 %vm135_vm8, %v987_v50 }
 0x204   :  { %v232_v54 = vpop.permute.xlu1 %231 }
 0x205   :  { %763 = vmatpush.xpose.msk.msra.mxu3 %vm135_vm8, %v232_v54 }
 0x20c   :  { %v228_v1 = vpop.permute.xlu1 %227 }
 0x275   :  { %v161_v56 = vpop.f32.mrf.mxu1 }
 0x276   :  { %v162_v57 = vadd.f32 %v161_v56, %v1006_v55 }
 0x278   :  { %v168_v58 = vsel %vm167_vm9, %v162_v57, -inf }
 0x279   :  { %169 = vmax.xlane.f32.xlu0 %v168_v58 }
 0x27d   :  { %v164_v60 = vpop.f32.mrf.mxu1 }
 0x27e   :  { %v165_v61 = vadd.f32 %v164_v60, %v1013_v59 }
 0x280   :  { %v171_v62 = vsel %vm167_vm9, %v165_v61, -inf }
 0x281   :  { %172 = vmax.xlane.f32.xlu1 %v171_v62 }
 0x28d   :  { %783 = vrot.lane.b32.xlu0 %v1019_v63, %s878_s11 }
 0x295   :  { %229 = vrot.lane.b32.xlu0 %v992_v51, %s875_s25 }
 0x29a   :  { %417 = vrot.lane.b32.xlu1 %v992_v51, %s879_s12 }
 0x29d   :  { %225 = vrot.lane.b32.xlu0 %v992_v51, %s877_s27 }
 0x2a5   :  { %421 = vrot.lane.b32.xlu0 %v992_v51, %s880_s1 }
 0x2ad   :  { %327 = vrot.lane.b32.xlu0 %v987_v50, %s881_s13 }
 0x2b5   :  { %419 = vrot.lane.b32.xlu0 %v987_v50, %s879_s12 }
 0x2ec   :  { %v170_v3 = vpop.xlane.xlu0 %169 }
 0x2ed   :  { %v174_v4 = vsub.f32 %v162_v57, %v170_v3 }
 0x2ef   :  { %v176_v5 = vmul.f32 1.442695, %v174_v4 }
 0x2f1   :  { %812 = vpow2.f32 %v176_v5 }
 0x2f4   :  { %v173_v6 = vpop.xlane.xlu1 %172 }
 0x2f5   :  { %v175_v7 = vsub.f32 %v165_v61, %v173_v6 }
 0x2f7   :  { %v813_v8 = vpop.eup %812  ;;  %v178_v9 = vmul.f32 1.442695, %v175_v7 }
 0x2f8   :  { %v180_v11 = vsel %vm167_vm9, %v813_v8, 0.0 }
 0x2f9   :  { %814 = vpow2.f32 %v178_v9  ;;  %181 = vadd.xlane.f32.xlu2 %v180_v11 }
 0x2ff   :  { %v815_v12 = vpop.eup %814  ;;  %v784_v13 = vpop.permute.xlu0 %783 }
 0x300   :  { %v183_v14 = vsel %vm167_vm9, %v815_v12, 0.0  ;;  %v785_v15 = vunpack.i.l.bf16 %v784_v13  ;;  %v786_v16 = vunpack.i.h.bf16 %v784_v13 }
 0x301   :  { %184 = vadd.xlane.f32.xlu1 %v183_v14 }
 0x302   :  { %216 = vmatpush.msra.mxu2 %v785_v15 }
 0x304   :  { %217 = vmatpush.msra.mxu2 %v786_v16 }
 0x306   :  { %741 = vmatpush.xpose.msk.msrb.mxu2 %vm135_vm8, %v232_v54 }
 0x307   :  { %v230_v17 = vpop.permute.xlu0 %229 }
 0x308   :  { %764 = vmatpush.xpose.msk.msra.mxu3 %vm135_vm8, %v230_v17 }
 0x30a   :  { %742 = vmatpush.xpose.msk.msrb.mxu2 %vm135_vm8, %v230_v17 }
 0x30b   :  { %744 = vmatmul.msk.f32.vlgmr.msra.gmra.mxu3 %vm135_vm8, %v228_v1 }
 0x30c   :  { %v418_v21 = vpop.permute.xlu1 %417 }
 0x30f   :  { %v226_v18 = vpop.permute.xlu0 %225 }
 0x311   :  { %423 = vrot.lane.b32.xlu2 %v987_v50, %s880_s1 }
 0x317   :  { %v422_v19 = vpop.permute.xlu0 %421 }
 0x319   :  { %323 = vrot.lane.b32.xlu2 %v987_v50, %s882_s14 }
 0x31a   :  { %325 = vrot.lane.b32.xlu1 %v992_v51, %s881_s13 }
 0x31f   :  { %v328_v20 = vpop.permute.xlu0 %327 }
 0x320   :  { %747 = vmatpush.xpose.msk.msrb.mxu0 %vm135_vm8, %v328_v20 }
 0x322   :  { %321 = vrot.lane.b32.xlu1 %v992_v51, %s882_s14 }
 0x327   :  { %v420_v29 = vpop.permute.xlu0 %419 }
 0x36c   :  { %v182_v22 = vpop.xlane.xlu2 %181 }
 0x36d   :  { %816 = vrcp.f32 %v182_v22 }
 0x373   :  { %v817_v23 = vpop.eup %816 }
 0x374   :  { %v185_v24 = vpop.xlane.xlu1 %184  ;;  %v424_v25 = vpop.permute.xlu2 %423  ;;  %v188_v26 = vmul.f32 %v817_v23, %v813_v8 }
 0x375   :  { %818 = vrcp.f32 %v185_v24  ;;  %753 = vmatpush.xpose.msk.msrb.mxu3 %vm135_vm8, %v424_v25 }
 0x376   :  { %739 = vmatmul.msk.f32.vlgmr.msra.gmra.mxu2 %vm167_vm9, %v188_v26 }
 0x379   :  { %754 = vmatpush.xpose.msk.msrb.mxu3 %vm135_vm8, %v422_v19 }
 0x37b   :  { %v819_v27 = vpop.eup %818 }
 0x37c   :  { %755 = vmatmul.msk.f32.vlgmr.msrb.gmra.mxu3 %vm135_vm8, %v418_v21  ;;  %v189_v28 = vmul.f32 %v819_v27, %v815_v12  ;;  %v324_v35 = vpop.permute.xlu2 %323 }
 0x37e   :  { %740 = vmatmul.msk.f32.gmra.mxu2 %vm167_vm9, %v189_v28 }
 0x384   :  { %756 = vmatmul.msk.f32.gmra.mxu3 %vm135_vm8, %v420_v29 }
 0x386   :  { %743 = vmatmul.msk.f32.vlgmr.msrb.gmra.mxu2 %vm135_vm8, %v226_v18 }
 0x38c   :  { %v326_v30 = vpop.permute.xlu1 %325 }
 0x38d   :  { %748 = vmatpush.xpose.msk.msrb.mxu0 %vm135_vm8, %v326_v30 }
 0x38e   :  { %v261_v31 = vpop.f32.mrf.mxu3 }
 0x38f   :  { %v262_v32 = vadd.f32 %v261_v31, %v1013_v59 }
 0x391   :  { %v267_v33 = vsel %vm167_vm9, %v262_v32, -inf }
 0x392   :  { %268 = vmax.xlane.f32.xlu1 %v267_v33 }
 0x394   :  { %v322_v34 = vpop.permute.xlu1 %321 }
 0x395   :  { %749 = vmatmul.msk.f32.vlgmr.msrb.gmra.mxu0 %vm135_vm8, %v322_v34 }
 0x39d   :  { %750 = vmatmul.msk.f32.gmra.mxu0 %vm135_vm8, %v324_v35 }
 0x3f9   :  { %v1056_v36 = vpop.f32.mrf.mxu2 }
 0x3ff   :  { %v450_v37 = vpop.f32.mrf.mxu3 }
 0x400   :  { %v451_v38 = vadd.f32 %v450_v37, %v1006_v55 }
 0x401   :  { %v1059_v39 = vpop.f32.mrf.mxu2 }
 0x402   :  { %v456_v40 = vsel %vm167_vm9, %v451_v38, -inf }
 0x403   :  { %457 = vmax.xlane.f32.xlu2 %v456_v40 }
 0x405   :  { %v269_v47 = vpop.xlane.xlu1 %268 }
 0x406   :  { %v271_v50 = vsub.f32 %v262_v32, %v269_v47 }
 0x407   :  { %v453_v41 = vpop.f32.mrf.mxu3 }
 0x408   :  { %v454_v42 = vadd.f32 %v453_v41, %v1013_v59  ;;  %v274_v52 = vmul.f32 1.442695, %v271_v50 }
 0x409   :  { %v258_v43 = vpop.f32.mrf.mxu2 }
 0x40a   :  { %v259_v44 = vadd.f32 %v258_v43, %v1006_v55  ;;  %v459_v45 = vsel %vm167_vm9, %v454_v42, -inf  ;;  %820 = vpow2.f32 %v274_v52 }
 0x40b   :  { %460 = vmax.xlane.f32.xlu2 %v459_v45 }
 0x40c   :  { %v264_v46 = vsel %vm167_vm9, %v259_v44, -inf }
 0x40d   :  { %265 = vmax.xlane.f32.xlu0 %v264_v46 }
 0x410   :  { %v1070_v57 = vpop.eup %820 }
 0x412   :  { %v354_v48 = vpop.f32.mrf.mxu0 }
 0x413   :  { %v355_v49 = vadd.f32 %v354_v48, %v1006_v55  ;;  %v279_v55 = vsel %vm167_vm9, %v1070_v57, 0.0 }
 0x415   :  { %v360_v51 = vsel %vm167_vm9, %v355_v49, -inf }
 0x416   :  { %361 = vmax.xlane.f32.xlu0 %v360_v51 }
 0x41a   :  { %v357_v53 = vpop.f32.mrf.mxu0 }
 0x41b   :  { %v358_v54 = vadd.f32 %v357_v53, %v1013_v59 }
 0x41d   :  { %v363_v56 = vsel %vm167_vm9, %v358_v54, -inf }
 0x41e   :  { %364 = vmax.xlane.f32.xlu1 %v363_v56 }
 0x423   :  { %788 = vrot.lane.b32.xlu2 %v1019_v63, %s883_s15 }
 0x426   :  { %280 = vadd.xlane.f32.xlu1 %v279_v55  ;;  %v547_v55 = vld [vmem:[%s1221_s4 + $0x18] sm:$0xff] }
 0x427   :  { %566 = vmatpush.msra.mxu0 %v547_v55  ;;  %v672_v55 = vld [vmem:[%s1225_s8 + $0x20] sm:$0xff] }
 0x42b   :  { %798 = vrot.lane.b32.xlu2 %v1019_v63, %s884_s16 }
 0x476   :  { %v458_v58 = vpop.xlane.xlu2 %457 }
 0x477   :  { %v462_v60 = vsub.f32 %v451_v38, %v458_v58  ;;  %v546_v58 = vld [vmem:[%s1221_s4 + $0x10] sm:$0xff] }
 0x478   :  { %567 = vmatpush.msra.mxu0 %v546_v58 }
 0x479   :  { %v464_v61 = vmul.f32 1.442695, %v462_v60  ;;  %v545_v60 = vld [vmem:[%s1221_s4 + $0x8] sm:$0xff] }
 0x47a   :  { %568 = vmatpush.msra.mxu0 %v545_v60 }
 0x47b   :  { %822 = vpow2.f32 %v464_v61  ;;  %v544_v61 = vld [vmem:[%s1221_s4] sm:$0xff] }
 0x47c   :  { %569 = vmatpush.msra.mxu0 %v544_v61 }
 0x47e   :  { %v461_v59 = vpop.xlane.xlu2 %460 }
 0x47f   :  { %v463_v13 = vsub.f32 %v454_v42, %v461_v59 }
 0x480   :  { %v266_v62 = vpop.xlane.xlu0 %265 }
 0x481   :  { %v1076_v1 = vpop.eup %822  ;;  %v270_v3 = vsub.f32 %v259_v44, %v266_v62  ;;  %v466_v18 = vmul.f32 1.442695, %v463_v13 }
 0x482   :  { %v468_v4 = vsel %vm167_vm9, %v1076_v1, 0.0 }
 0x483   :  { %v272_v5 = vmul.f32 1.442695, %v270_v3  ;;  %469 = vadd.xlane.f32.xlu0 %v468_v4 }
 0x485   :  { %824 = vpow2.f32 %v272_v5 }
 0x486   :  { %v789_v6 = vpop.permute.xlu2 %788 }
 0x487   :  { %v790_v7 = vunpack.i.l.bf16 %v789_v6  ;;  %v791_v8 = vunpack.i.h.bf16 %v789_v6 }
 0x489   :  { %312 = vmatpush.msra.mxu2 %v790_v7  ;;  %v362_v9 = vpop.xlane.xlu0 %361 }
 0x48a   :  { %v366_v11 = vsub.f32 %v355_v49, %v362_v9 }
 0x48b   :  { %v825_v12 = vpop.eup %824  ;;  %313 = vmatpush.msra.mxu2 %v791_v8 }
 0x48c   :  { %v368_v14 = vmul.f32 1.442695, %v366_v11  ;;  %v276_v15 = vsel %vm167_vm9, %v825_v12, 0.0 }
 0x48d   :  { %277 = vadd.xlane.f32.xlu0 %v276_v15 }
 0x48e   :  { %826 = vpow2.f32 %v368_v14  ;;  %v799_v16 = vpop.permute.xlu2 %798 }
 0x48f   :  { %v800_v17 = vunpack.i.l.bf16 %v799_v16  ;;  %v801_v20 = vunpack.i.h.bf16 %v799_v16  ;;  %828 = vpow2.f32 %v466_v18 }
 0x491   :  { %v365_v19 = vpop.xlane.xlu1 %364  ;;  %408 = vmatpush.msrb.mxu1 %v800_v17 }
 0x492   :  { %v367_v22 = vsub.f32 %v358_v54, %v365_v19 }
 0x493   :  { %409 = vmatpush.msrb.mxu1 %v801_v20 }
 0x494   :  { %v827_v21 = vpop.eup %826  ;;  %v370_v24 = vmul.f32 1.442695, %v367_v22 }
 0x495   :  { %v372_v23 = vsel %vm167_vm9, %v827_v21, 0.0  ;;  %v829_v25 = vpop.eup %828 }
 0x496   :  { %373 = vadd.xlane.f32.xlu1 %v372_v23  ;;  %830 = vpow2.f32 %v370_v24  ;;  %v471_v26 = vsel %vm167_vm9, %v829_v25, 0.0 }
 0x499   :  { %v281_v31 = vpop.xlane.xlu1 %280 }
 0x49c   :  { %v831_v27 = vpop.eup %830 }
 0x49d   :  { %v375_v28 = vsel %vm167_vm9, %v831_v27, 0.0 }
 0x49e   :  { %472 = vadd.xlane.f32.xlu1 %v471_v26 }
 0x4a1   :  { %793 = vrot.lane.b32.xlu0 %v1019_v63, %s885_s0 }
 0x4a6   :  { %376 = vadd.xlane.f32.xlu1 %v375_v28  ;;  %v632_v28 = vld [vmem:[%s1223_s6 + $0x18] sm:$0xff] }
 0x4a7   :  { %655 = vmatpush.msra.mxu1 %v632_v28 }
 0x4f6   :  { %v470_v29 = vpop.xlane.xlu0 %469 }
 0x500   :  { %v278_v30 = vpop.xlane.xlu0 %277 }
 0x501   :  { %832 = vrcp.f32 %v278_v30  ;;  %v630_v30 = vld [vmem:[%s1223_s6 + $0x8] sm:$0xff] }
 0x502   :  { %834 = vrcp.f32 %v281_v31  ;;  %v629_v31 = vld [vmem:[%s1223_s6] sm:$0xff] }
 0x507   :  { %v833_v32 = vpop.eup %832 }
 0x508   :  { %v284_v33 = vmul.f32 %v833_v32, %v825_v12  ;;  %v835_v35 = vpop.eup %834 }
 0x509   :  { %v374_v34 = vpop.xlane.xlu1 %373  ;;  %v285_v63 = vmul.f32 %v835_v35, %v1070_v57  ;;  %v682_v35 = vld [vmem:[%s1225_s8 + $0x70] sm:$0xff] }
 0x50a   :  { %836 = vrcp.f32 %v374_v34  ;;  %745 = vmatmul.msk.f32.vlgmr.msra.gmra.mxu2 %vm167_vm9, %v284_v33  ;;  %v683_v34 = vld [vmem:[%s1225_s8 + $0x78] sm:$0xff] }
 0x50b   :  { %838 = vrcp.f32 %v470_v29  ;;  %v631_v29 = vld [vmem:[%s1223_s6 + $0x10] sm:$0xff]  ;;  %688 = vmatpush.msra.mxu3 %v683_v34 }
 0x50c   :  { %656 = vmatpush.msra.mxu1 %v631_v29 }
 0x50d   :  { %689 = vmatpush.msra.mxu3 %v682_v35 }
 0x50e   :  { %657 = vmatpush.msra.mxu1 %v630_v30 }
 0x510   :  { %v837_v37 = vpop.eup %836  ;;  %658 = vmatpush.msra.mxu1 %v629_v31 }
 0x511   :  { %v473_v38 = vpop.xlane.xlu1 %472  ;;  %v380_v40 = vmul.f32 %v837_v37, %v827_v21  ;;  %v839_v43 = vpop.eup %838 }
 0x512   :  { %746 = vmatmul.msk.f32.gmra.mxu2 %vm167_vm9, %v285_v63  ;;  %840 = vrcp.f32 %v473_v38  ;;  %v476_v45 = vmul.f32 %v839_v43, %v1076_v1  ;;  %v681_v63 = vld [vmem:[%s1225_s8 + $0x68] sm:$0xff]  ;;  %v680_v38 = vld [vmem:[%s1225_s8 + $0x60] sm:$0xff]  ;;  %v678_v43 = vld [vmem:[%s1225_s8 + $0x50] sm:$0xff] }
 0x513   :  { %751 = vmatmul.msk.f32.vlgmr.msrb.gmra.mxu1 %vm167_vm9, %v380_v40  ;;  %v794_v41 = vpop.permute.xlu0 %793  ;;  %690 = vmatpush.msra.mxu3 %v681_v63  ;;  %v679_v40 = vld [vmem:[%s1225_s8 + $0x58] sm:$0xff] }
 0x514   :  { %v795_v42 = vunpack.i.l.bf16 %v794_v41  ;;  %v796_v44 = vunpack.i.h.bf16 %v794_v41 }
 0x515   :  { %691 = vmatpush.msra.mxu3 %v680_v38 }
 0x516   :  { %504 = vmatpush.msrb.mxu2 %v795_v42 }
 0x517   :  { %692 = vmatpush.msra.mxu3 %v679_v40 }
 0x518   :  { %505 = vmatpush.msrb.mxu2 %v796_v44  ;;  %v841_v47 = vpop.eup %840 }
 0x519   :  { %v377_v46 = vpop.xlane.xlu1 %376  ;;  %v477_v49 = vmul.f32 %v841_v47, %v829_v25  ;;  %693 = vmatpush.msra.mxu3 %v678_v43 }
 0x51a   :  { %842 = vrcp.f32 %v377_v46  ;;  %757 = vmatmul.msk.f32.vlgmr.msrb.gmra.mxu2 %vm167_vm9, %v476_v45  ;;  %v677_v46 = vld [vmem:[%s1225_s8 + $0x48] sm:$0xff] }
 0x51b   :  { %694 = vmatpush.msra.mxu3 %v677_v46 }
 0x520   :  { %v843_v48 = vpop.eup %842 }
 0x521   :  { %v381_v50 = vmul.f32 %v843_v48, %v831_v27  ;;  %v676_v48 = vld [vmem:[%s1225_s8 + $0x40] sm:$0xff] }
 0x522   :  { %758 = vmatmul.msk.f32.gmra.mxu2 %vm167_vm9, %v477_v49  ;;  %695 = vmatpush.msra.mxu3 %v676_v48 }
 0x523   :  { %752 = vmatmul.msk.f32.gmra.mxu1 %vm167_vm9, %v381_v50 }
 0x58d   :  { %v315_v51 = vpop.f32.mrf.mxu2 }
 0x58e   :  { %515 = vrot.lane.b32.xlu0 %v315_v51, %s886_s17  ;;  %v674_v51 = vld [vmem:[%s1225_s8 + $0x30] sm:$0xff] }
 0x590   :  { %v411_v52 = vpop.f32.mrf.mxu1 }
 0x591   :  { %523 = vrot.lane.b32.xlu2 %v411_v52, %s887_s18 }
 0x595   :  { %v318_v53 = vpop.f32.mrf.mxu2 }
 0x596   :  { %517 = vrot.lane.b32.xlu0 %v318_v53, %s886_s17 }
 0x59d   :  { %v507_v54 = vpop.f32.mrf.mxu2 }
 0x59e   :  { %531 = vrot.lane.b32.xlu1 %v507_v54, %s888_s19  ;;  %v673_v54 = vld [vmem:[%s1225_s8 + $0x28] sm:$0xff] }
 0x5a0   :  { %v414_v56 = vpop.f32.mrf.mxu1 }
 0x5a1   :  { %525 = vrot.lane.b32.xlu2 %v414_v56, %s887_s18 }
 0x5a5   :  { %v510_v57 = vpop.f32.mrf.mxu2 }
 0x5a6   :  { %533 = vrot.lane.b32.xlu0 %v510_v57, %s888_s19 }
 0x5eb   :  { %v524_v1 = vpop.permute.xlu2 %523 }
 0x5fb   :  { %v526_v8 = vpop.permute.xlu2 %525 }
 0x600   :  { %v516_v59 = vpop.permute.xlu0 %515 }
 0x601   :  { %v537_v62 = vsel %vm135_vm8, %v1056_v36, %v516_v59  ;;  %v803_v36 = vld [vmem:[%s1222_s5] ss:$0 sm:$0xff]  ;;  %v671_v59 = vld [vmem:[%s1225_s8 + $0x18] sm:$0xff] }
 0x602   :  { %v539_v4 = vsel %vm167_vm9, %v537_v62, %v524_v1 }
 0x608   :  { %v518_v3 = vpop.permute.xlu0 %517 }
 0x609   :  { %v538_v7 = vsel %vm135_vm8, %v1059_v39, %v518_v3 }
 0x60a   :  { %v540_v11 = vsel %vm167_vm9, %v538_v7, %v526_v8  ;;  %v669_v7 = vld [vmem:[%s1225_s8 + $0x8] sm:$0xff]  ;;  %v668_v8 = vld [vmem:[%s1225_s8] sm:$0xff] }
 0x610   :  { %v532_v5 = vpop.permute.xlu1 %531 }
 0x611   :  { %v542_v6 = vsel %vm541_vm10, %v539_v4, %v532_v5 }
 0x612   :  { %759 = vmatmul.msk.f32.vlgmr.msra.gmra.mxu0 %vm38_vm0, %v542_v6  ;;  %v670_v6 = vld [vmem:[%s1225_s8 + $0x10] sm:$0xff] }
 0x618   :  { %v534_v9 = vpop.permute.xlu0 %533 }
 0x619   :  { %v543_v12 = vsel %vm541_vm10, %v540_v11, %v534_v9  ;;  %v804_v9 = vld [vmem:[%s1224_s7] ss:$0 sm:$0xff] }
 0x61a   :  { %760 = vmatmul.msk.f32.gmra.mxu0 %vm38_vm0, %v543_v12 }
 0x68f   :  { %v571_v13 = vpop.f32.mrf.mxu0 }
 0x690   :  { %v577_v14 = vadd.f32 %v571_v13, %v949_v0 }
 0x692   :  { %v1119_v15 = vadd.f32 %v803_v36, %v577_v14 }
 0x694   :  { %v585_v16 = vsel %vm38_vm0, %v1119_v15, 0.0 }
 0x695   :  { %586 = vadd.xlane.f32.xlu2 %v585_v16 }
 0x697   :  { %v574_v39 = vpop.f32.mrf.mxu0 }
 0x698   :  { %v578_v17 = vadd.f32 %v574_v39, %v956_v2  ;;  %v805_v39 = vld [vmem:[%s1226_s9] ss:$0 sm:$0xff]  ;;  %s890_s9 = smov 128  }
 0x69a   :  { %v1124_v18 = vadd.f32 %v803_v36, %v578_v17 }
 0x69c   :  { %v588_v19 = vsel %vm38_vm0, %v1124_v18, 0.0 }
 0x69d   :  { %589 = vadd.xlane.f32.xlu0 %v588_v19 }
 0x708   :  { %v587_v20 = vpop.xlane.xlu2 %586 }
 0x709   :  { %v591_v21 = vmul.f32 %v587_v20, %v960_v10 }
 0x70b   :  { %v593_v0 = vsub.f32 %v1119_v15, %v591_v21 }
 0x70d   :  { %v595_v22 = vmul.f32 %v593_v0, %v593_v0 }
 0x70f   :  { %v597_v23 = vsel %vm38_vm0, %v595_v22, 0.0 }
 0x710   :  { %598 = vadd.xlane.f32.xlu1 %v597_v23  ;;  %v590_v24 = vpop.xlane.xlu0 %589 }
 0x711   :  { %v592_v25 = vmul.f32 %v590_v24, %v960_v10 }
 0x713   :  { %v1133_v2 = vsub.f32 %v1124_v18, %v592_v25 }
 0x715   :  { %v596_v26 = vmul.f32 %v1133_v2, %v1133_v2 }
 0x717   :  { %v600_v27 = vsel %vm38_vm0, %v596_v26, 0.0 }
 0x718   :  { %601 = vadd.xlane.f32.xlu2 %v600_v27 }
 0x783   :  { %v599_v32 = vpop.xlane.xlu1 %598 }
 0x784   :  { %v603_v33 = vmul.f32 %v599_v32, %v960_v10 }
 0x786   :  { %v605_v37 = vadd.f32 1e-05, %v603_v33 }
 0x788   :  { %844 = vrsqrt.f32 %v605_v37  ;;  %vm613_vm12 = vweird.f32 %v605_v37 }
 0x78b   :  { %v602_v41 = vpop.xlane.xlu2 %601 }
 0x78c   :  { %v604_v42 = vmul.f32 %v602_v41, %v960_v10  ;;  %v675_v10 = vld [vmem:[%s1225_s8 + $0x38] sm:$0xff]  ;;  %s889_s8 = smov [#allocation2]  }
 0x78d   :  { %696 = vmatpush.msra.mxu3 %v675_v10  ;;  %s719_s7 = sshll.u32 %s889_s8, 4  ;;  %s720_s7 = int_to_ptr.vmem [resolvable:$true] %s719_s7 }
 0x78e   :  { %v845_v44 = vpop.eup %844  ;;  %v606_v45 = vadd.f32 1e-05, %v604_v42 }
 0x78f   :  { %v608_v47 = vmul.f32 %v845_v44, %v605_v37  ;;  %vm614_vm11 = vweird.f32 %v845_v44  ;;  %697 = vmatpush.msra.mxu3 %v674_v51 }
 0x790   :  { %846 = vrsqrt.f32 %v606_v45  ;;  %vm615_vm13 = vmor %vm613_vm12, %vm614_vm11  ;;  %vm623_vm15 = vweird.f32 %v606_v45 }
 0x791   :  { %v609_v49 = vmul.f32 %v845_v44, %v608_v47  ;;  %698 = vmatpush.msra.mxu3 %v673_v54 }
 0x793   :  { %v610_v50 = vmul.f32 0.5, %v609_v49  ;;  %699 = vmatpush.msra.mxu3 %v672_v55 }
 0x795   :  { %v611_v52 = vsub.f32 1.5, %v610_v50  ;;  %700 = vmatpush.msra.mxu3 %v671_v59 }
 0x796   :  { %v847_v53 = vpop.eup %846 }
 0x797   :  { %v612_v56 = vmul.f32 %v845_v44, %v611_v52  ;;  %v618_v57 = vmul.f32 %v847_v53, %v606_v45  ;;  %vm624_vm14 = vweird.f32 %v847_v53  ;;  %701 = vmatpush.msra.mxu3 %v670_v6 }
 0x798   :  { %vm625_vm1 = vmor %vm623_vm15, %vm624_vm14 }
 0x799   :  { %v616_v58 = vsel %vm615_vm13, %v845_v44, %v612_v56  ;;  %v619_v60 = vmul.f32 %v847_v53, %v618_v57  ;;  %702 = vmatpush.msra.mxu3 %v669_v7 }
 0x79a   :  { %v627_v61 = vmul.f32 %v616_v58, %v593_v0 }
 0x79b   :  { %v620_v62 = vmul.f32 0.5, %v619_v60  ;;  %703 = vmatpush.msra.mxu3 %v668_v8 }
 0x79c   :  { %761 = vmatmul.msk.f32.vlgmr.msra.gmra.mxu1 %vm38_vm0, %v627_v61 }
 0x79d   :  { %v621_v1 = vsub.f32 1.5, %v620_v62 }
 0x79f   :  { %v622_v3 = vmul.f32 %v847_v53, %v621_v1 }
 0x7a1   :  { %v626_v4 = vsel %vm625_vm1, %v847_v53, %v622_v3 }
 0x7a2   :  { %v628_v5 = vmul.f32 %v626_v4, %v1133_v2 }
 0x7a4   :  { %762 = vmatmul.msk.f32.gmra.mxu1 %vm38_vm0, %v628_v5 }
 0x819   :  { %v660_v11 = vpop.f32.mrf.mxu1 }
 0x81a   :  { %v661_v12 = vadd.f32 %v804_v9, %v660_v11 }
 0x81c   :  { %v666_v36 = vmax.f32 %v661_v12, 0.0 }
 0x81e   :  { %704 = vmatmul.f32.vlgmr.msra.gmra.mxu3 %v666_v36 }
 0x821   :  { %v663_v13 = vpop.f32.mrf.mxu1 }
 0x822   :  { %v664_v14 = vadd.f32 %v804_v9, %v663_v13 }
 0x824   :  { %v667_v16 = vmax.f32 %v664_v14, 0.0 }
 0x826   :  { %707 = vmatmul.f32.gmra.mxu3 %v667_v16 }
 0x8a1   :  { %v705_v17 = vpop.f32.mrf.mxu3 }
 0x8a2   :  { %v706_v19 = vadd.f32 %v805_v39, %v705_v17 }
 0x8a4   :  { %v711_v20 = vadd.f32 %v706_v19, %v1119_v15 }
 0x8a6   :  { %713 = vst.msk [vmem:[#allocation2] sm:$0xff] %vm38_vm0, %v711_v20 }
 0x8a9   :  { %v708_v21 = vpop.f32.mrf.mxu3 }
 0x8aa   :  { %v709_v0 = vadd.f32 %v805_v39, %v708_v21 }
 0x8ac   :  { %v712_v22 = vadd.f32 %v709_v0, %v1124_v18 }
 0x8ae   :  { %714 = vst.msk [vmem:[#allocation2 + $0x8] sm:$0xff] %vm38_vm0, %v712_v22 }
 0x8af   :  { %727 = dma.vmem_to_hbm [thread:$0]  %s720_s7, 256, %s722_s2, [#allocation3], %s890_s9, %s890_s9, %s886_s17  }
 0x8b0   :  { %872 = dma.done.wait [#allocation3], 256  }
 0x8b1   :  { %873 = vsyncadd [#allocation3], 4294967040 }
 0x8b2   :  { %732 = vsyncpa [#allocation3], 1 }

</bundles_post_ra>
